<compile_context>
chip_gen: v7x
topology: tpu7x:2x2x1
jax: 0.10.0
libtpu: 0.0.40
codegen_flags: <defaults>
</compile_context>

<pallas_src>
import functools

import jax
import jax.numpy as jnp
from jax.experimental import pallas as pl
from jax.experimental.pallas import tpu as pltpu


def _rmsnorm_kernel(x_ref, sb_ref, o_ref, *, eps):
    """Row-wise L2 normalize * sqrt(D), with pre-fused scale / shift.

    x_ref  : (1, TL, D)  activation tile (one batch element, TL time steps)
    sb_ref : (1, 2, D)   per-batch fused params:
                         row 0: scale = sqrt(D) * gamma_param * gamma_cond
                         row 1: shift = beta_cond (zeros if unconditioned)
    o_ref  : (1, TL, D)
    """
    x = x_ref[0].astype(jnp.float32)                     # (TL, D)
    sb = sb_ref[0].astype(jnp.float32)                   # (2, D)
    g = sb[0:1, :]                                       # (1, D) broadcasts over time
    b = sb[1:2, :]                                       # (1, D)

    # F.normalize(x, dim=-1): x / max(||x||_2, eps)
    ss = jnp.sum(x * x, axis=-1, keepdims=True)          # (TL, 1)
    inv = jnp.reciprocal(jnp.maximum(jnp.sqrt(ss), eps)) # (TL, 1)

    o_ref[0] = (x * inv * g + b).astype(o_ref.dtype)


def rmsnorm(x, gamma=None, cond=None, lin_w=None, lin_b=None,
            *, eps=1e-12, time_tile=512):
    """x: (B, T, D). gamma: (D,) or None. cond: (B, dim_cond) or None.

    lin_w: (dim_cond, 2D), lin_b: (2D,) — the to_gamma_beta Linear, hoisted to XLA.
    Returns (B, T, D) in x.dtype.
    """
    B, T, D = x.shape
    scale = float(D) ** 0.5

    gamma_vec = (gamma if gamma is not None
                 else jnp.ones((D,), jnp.float32)).astype(jnp.float32)

    if cond is not None:
        # Hoisted conditioning Linear (tiny matmul better served by XLA; keeps
        # lin_w out of VMEM and an MXU push out of the kernel).
        gb_lin = (cond.astype(jnp.float32) @ lin_w.astype(jnp.float32)
                  + lin_b.astype(jnp.float32))                       # (B, 2D)
        g = scale * gamma_vec[None, :] * gb_lin[:, :D]               # fused scale
        b = gb_lin[:, D:]
    else:
        g = jnp.broadcast_to(scale * gamma_vec[None, :], (B, D))
        b = jnp.zeros((B, D), jnp.float32)

    # Stack as (B, 2, D): scale in row 0, shift in row 1 — lane-dense, no
    # lane-dim slicing needed inside the kernel.
    sb = jnp.stack([g, b], axis=1)                                   # (B, 2, D)

    # Time tiling: whole sequence per step when short, else fixed tiles.
    tl = T if T <= time_tile else time_tile
    grid = (B, pl.cdiv(T, tl))

    kernel = functools.partial(_rmsnorm_kernel, eps=eps)

    grid_spec = pltpu.PrefetchScalarGridSpec(
        num_scalar_prefetch=0,
        grid=grid,
        in_specs=[
            pl.BlockSpec((1, tl, D), lambda bi, ti: (bi, ti, 0)),    # x tile
            pl.BlockSpec((1, 2, D), lambda bi, ti: (bi, 0, 0)),      # fused scale|shift
        ],
        out_specs=pl.BlockSpec((1, tl, D), lambda bi, ti: (bi, ti, 0)),
    )

    return pl.pallas_call(
        kernel,
        out_shape=jax.ShapeDtypeStruct((B, T, D), x.dtype),
        grid_spec=grid_spec,
        compiler_params=pltpu.CompilerParams(
            dimension_semantics=("parallel", "parallel")),
    )(x, sb)


def reference(x, gamma, cond, lin_w, lin_b, eps=1e-12):
    """Pure-JAX reference matching the PyTorch module exactly."""
    D = x.shape[-1]
    norm = jnp.sqrt(jnp.sum(x * x, axis=-1, keepdims=True))
    g_param = gamma if gamma is not None else jnp.ones((D,), x.dtype)
    out = x / jnp.maximum(norm, eps) * (D ** 0.5) * g_param[None, None, :]
    if cond is not None:
        gb = cond @ lin_w + lin_b
        out = out * gb[:, None, :D] + gb[:, None, D:]
    return out


if __name__ == "__main__":
    # Small shapes consistent with the module; D is a multiple of 128 so the
    # lane dim is dense (unmasked stores).
    B, T, D, dim_cond = 2, 64, 128, 32

    key = jax.random.PRNGKey(0)
    kx, kc, kg, kw, kb = jax.random.split(key, 5)

    x = jax.random.normal(kx, (B, T, D), jnp.float32)
    cond = jax.random.normal(kc, (B, dim_cond), jnp.float32)
    gamma = 1.0 + 0.1 * jax.random.normal(kg, (D,), jnp.float32)
    bound = 1.0 / (dim_cond ** 0.5)
    lin_w = jax.random.uniform(kw, (dim_cond, 2 * D), jnp.float32, -bound, bound)
    lin_b = jax.random.uniform(kb, (2 * D,), jnp.float32, -bound, bound)

    # Conditioned path (dim_cond set).
    out = rmsnorm(x, gamma=gamma, cond=cond, lin_w=lin_w, lin_b=lin_b)
    jax.block_until_ready(out)
    ref = reference(x, gamma, cond, lin_w, lin_b)
    assert jnp.allclose(out, ref, rtol=1e-4, atol=1e-4), "conditioned RMSNorm mismatch"

    # Unconditioned path (cond=None branch of the module).
    out_nc = rmsnorm(x, gamma=gamma)
    jax.block_until_ready(out_nc)
    ref_nc = reference(x, gamma, None, None, None)
    assert jnp.allclose(out_nc, ref_nc, rtol=1e-4, atol=1e-4), "plain RMSNorm mismatch"

    # scale=False path (gamma=None in the module).
    out_ns = rmsnorm(x, gamma=None, cond=cond, lin_w=lin_w, lin_b=lin_b)
    jax.block_until_ready(out_ns)
    ref_ns = reference(x, None, cond, lin_w, lin_b)
    assert jnp.allclose(out_ns, ref_ns, rtol=1e-4, atol=1e-4), "no-scale RMSNorm mismatch"

    print("KERNEL_OK")
</pallas_src>

<mosaic_0001>
module attributes {stable_mosaic.version = 11 : i64} {
  func.func @_rmsnorm_kernel(%arg0: i32, %arg1: i32, %arg2: memref<1x64x128xf32, #tpu.memory_space<vmem>>, %arg3: memref<1x2x128xf32, #tpu.memory_space<vmem>>, %arg4: memref<1x64x128xf32, #tpu.memory_space<vmem>>) attributes {dimension_semantics = [#tpu.dimension_semantics<parallel>, #tpu.dimension_semantics<parallel>], iteration_bounds = array<i64: 2, 1>, scalar_prefetch = 0 : i64, scratch_operands = 0 : i64, tpu.core_type = #tpu.core_type<tc>, window_params = [{transform_indices = @transform_0, window_bounds = array<i64: 1, 64, 128>}, {transform_indices = @transform_1, window_bounds = array<i64: 1, 2, 128>}, {transform_indices = @transform_2, window_bounds = array<i64: 1, 64, 128>}]} {
    %c0 = arith.constant 0 : index
    %c0_0 = arith.constant 0 : index
    %c0_1 = arith.constant 0 : index
    %0 = vector.load %arg2[%c0, %c0_0, %c0_1] : memref<1x64x128xf32, #tpu.memory_space<vmem>>, vector<1x64x128xf32>
    %1 = vector.shape_cast %0 : vector<1x64x128xf32> to vector<64x128xf32>
    %c0_2 = arith.constant 0 : index
    %c0_3 = arith.constant 0 : index
    %c0_4 = arith.constant 0 : index
    %2 = vector.load %arg3[%c0_2, %c0_3, %c0_4] : memref<1x2x128xf32, #tpu.memory_space<vmem>>, vector<1x2x128xf32>
    %3 = vector.shape_cast %2 : vector<1x2x128xf32> to vector<2x128xf32>
    %4 = vector.extract_strided_slice %3 {offsets = [0, 0], sizes = [1, 128], strides = [1, 1]} : vector<2x128xf32> to vector<1x128xf32>
    %5 = vector.extract_strided_slice %3 {offsets = [1, 0], sizes = [1, 128], strides = [1, 1]} : vector<2x128xf32> to vector<1x128xf32>
    %6 = arith.mulf %1, %1 : vector<64x128xf32>
    %cst = arith.constant dense<0.000000e+00> : vector<64xf32>
    %7 = vector.multi_reduction <add>, %6, %cst [1] : vector<64x128xf32> to vector<64xf32>
    %8 = vector.shape_cast %7 : vector<64xf32> to vector<64x1xf32>
    %9 = math.sqrt %8 : vector<64x1xf32>
    %cst_5 = arith.constant 9.99999996E-13 : f32
    %10 = vector.broadcast %cst_5 : f32 to vector<64x1xf32>
    %11 = arith.maximumf %9, %10 : vector<64x1xf32>
    %cst_6 = arith.constant 1.000000e+00 : f32
    %12 = vector.broadcast %cst_6 : f32 to vector<64x1xf32>
    %13 = arith.divf %12, %11 : vector<64x1xf32>
    %14 = vector.broadcast %13 : vector<64x1xf32> to vector<64x128xf32>
    %15 = arith.mulf %1, %14 : vector<64x128xf32>
    %16 = vector.broadcast %4 : vector<1x128xf32> to vector<64x128xf32>
    %17 = arith.mulf %15, %16 : vector<64x128xf32>
    %18 = vector.broadcast %5 : vector<1x128xf32> to vector<64x128xf32>
    %19 = arith.addf %17, %18 : vector<64x128xf32>
    %c0_7 = arith.constant 0 : index
    %c0_8 = arith.constant 0 : index
    %c0_9 = arith.constant 0 : index
    %20 = vector.load %arg4[%c0_7, %c0_8, %c0_9] : memref<1x64x128xf32, #tpu.memory_space<vmem>>, vector<1x64x128xf32>
    %21 = vector.shape_cast %20 : vector<1x64x128xf32> to vector<64x128xf32>
    %22 = vector.shape_cast %19 : vector<64x128xf32> to vector<1x64x128xf32>
    tpu.vector_store %arg4[%c0_7, %c0_8, %c0_9], %22 {strides = array<i32>} : memref<1x64x128xf32, #tpu.memory_space<vmem>>, vector<1x64x128xf32>,
    return
  }
  func.func @transform_0(%arg0: i32, %arg1: i32) -> (i32, i32, i32) {
    %c0_i32 = arith.constant 0 : i32
    %c0_i32_0 = arith.constant 0 : i32
    return %arg0, %arg1, %c0_i32 : i32, i32, i32
  }
  func.func @transform_1(%arg0: i32, %arg1: i32) -> (i32, i32, i32) {
    %c0_i32 = arith.constant 0 : i32
    %c0_i32_0 = arith.constant 0 : i32
    %c0_i32_1 = arith.constant 0 : i32
    return %arg0, %c0_i32, %c0_i32_0 : i32, i32, i32
  }
  func.func @transform_2(%arg0: i32, %arg1: i32) -> (i32, i32, i32) {
    %c0_i32 = arith.constant 0 : i32
    %c0_i32_0 = arith.constant 0 : i32
    return %arg0, %arg1, %c0_i32 : i32, i32, i32
  }
}

</mosaic_0001>

<bundles_post_ra>
// kernel: tpu_custom_call.1
= control target key start
LH: loop header
LB: loop body
LE: loop exit
PB: predicated region body
PF: predicated region fallthrough
CT: control target
= control target key end

     0   :  { %7 = vsyncpa [#allocation3], 0  ;;  %s1110_s0 = inlined_call_operand.hbm [shape: f32[2,64,128], index: 0, kind: input, shape index: {}]   ;;  %s1111_s1 = inlined_call_operand.hbm [shape: f32[2,2,128], index: 1, kind: input, shape index: {}]   ;;  %s1112_s2 = inlined_call_operand.hbm [shape: f32[2,64,128], index: 2, kind: output, shape index: {}]  }
   0x1   :  { %9 = vsyncpa [#allocation3 + $0x1], 0 }
   0x2   :  { %10 = vsyncpa [#allocation6], 0 }
   0x3   :  { %12 = vsyncpa [#allocation6 + $0x1], 0 }
   0x4   :  { %13 = vsyncpa [#allocation4], 0 }
   0x5   :  { %15 = vsyncpa [#allocation4 + $0x1], 0  ;;  %s791_s9 = smov 0   ;;  %s793_s10 = smov 0  }
   0x6   :  { %s795_s11 = smov 0   ;;  %s797_s12 = smov 0  }
   0x7   :  { %s799_s13 = smov 0   ;;  %s801_s14 = smov 0  }
   0x8 LB: > { %s498_s15 = sadd.s32 4294967295, %s767_s14   ;;  %s499_s16 = sadd.s32 4294967294, %s767_s14   ;;  %s767_s14 = sphi %s801_s14, %s21_s14   ;;  %s763_s13 = sphi %s799_s13, %s1131_s13   ;;  %s759_s12 = sphi %s797_s12, %s1130_s12   ;;  %s755_s11 = sphi %s795_s11, %s1129_s11   ;;  %s751_s10 = sphi %s793_s10, %s1128_s10   ;;  %s747_s9 = sphi %s791_s9, %s1127_s9  }
   0x9   : > { %s33_s17 = sadd.s32 1, %s763_s13  ;;  %s42_s18 = sadd.s32 1, %s755_s11 }
   0xa   : > { %p35_p0 = scmp.ge.s32.totalorder %s33_s17, 2  ;;  %p49_p1 = scmp.ne.s32.totalorder %s755_s11, %s751_s10 }
   0xb   : > { %p50_p2 = scmp.eq.s32.totalorder %s767_s14, 0  ;;  %p55_p3 = scmp.ne.s32.totalorder %s751_s10, %s747_s9 }
   0xc   : > { %s1133_s17 = smov (%p35_p0, %s33_s17), 0  ;;  %p56_p5 = scmp.eq.s32.totalorder %s498_s15, 0 }
   0xd   : > { %p832_p4 = por %p50_p2, %p49_p1  ;;  %s37_s20 = ssub.s32 %s763_s13, %s1133_s17 }
   0xe   : > { %p107_p6 = scmp.eq.s32.totalorder %s498_s15, 1  ;;  %p40_p7 = scmp.eq.s32.totalorder %s37_s20, 0 }
   0xf   : > { %p838_p8 = por %p56_p5, %p55_p3  ;;  %p113_p10 = scmp.eq.s32.totalorder %s499_s16, 1 }
  0x10   : > { %p842_p9 = por %p107_p6, %p49_p1  ;;  %p535_p13 = scmp.lt.s32.totalorder %s767_s14, 2 }
  0x11   : > { %s1116_s21 = scalar_select %p838_p8, 1, 0 }
  0x12   : > { %s1117_s22 = scalar_select %p842_p9, 1, 0 }
  0x13   : > { %s847_s23 = scalar_select %p40_p7, %s755_s11, %s42_s18  }
  0x14   : > { %p849_p11 = por %p113_p10, %p55_p3  ;;  %s856_s25 = sand.u32 1, %s755_s11  }
  0x15   : > { %s502_s26 = sshll.u32 %s856_s25, 6  ;;  %s516_s27 = sshll.u32 %s763_s13, 10 }
  0x16   : > { %s1118_s24 = scalar_select %p849_p11, 1, 0 }
  0x17   : > { %s863_s30 = scalar_lea.hbm %s1110_s0, %s516_s27  ;;  %s137_s3 = scalar_lea.vmem [#allocation2], %s502_s26 }
  0x18   : > { %s146_s4 = sshll.u32 %s137_s3, 4  ;;  %p869_p0 = pnand %p535_p13, %p832_p4  ;;  %s865_s4 = int_to_ptr.vmem [resolvable:$true] %s146_s4 }
  0x19   : > { %s134_s6 = scalar_lea.sflag [#allocation3], %s856_s25  ;;  %s621_s7 = scalar_lea.hbm %s863_s30, 1024 }
  0x1a   : > { %p622_p2 = scmp.ne.s32.totalorder %s863_s30, %s621_s7  ;;  %p623_p3 = pneg %p869_p0 }
  0x1b   : > { %s626_s16 = scalar_lea.hbm %s1110_s0, 2048  ;;  %p627_p4 = scmp.lt.u32.totalorder %s863_s30, %s1110_s0 }
  0x1c   : > { %p624_p5 = pnand %p623_p3, %p622_p2  ;;  %p628_p7 = scmp.lt.u32.totalorder %s626_s16, %s621_s7 }
  0x1d   : > { %p630_p13 = scmp.lt.u32.totalorder %s621_s7, %s863_s30 }
  0x1e   : > { %p625_p6 = pneg %p624_p5  ;;  %p629_p10 = por %p628_p7, %p627_p4 }
  0x20   : > { %p631_p12 = por %p630_p13, %p629_p10 }
  0x22   : > { %p632_p1 = pnand %p631_p12, %p625_p6 }
  0x24   : > { %635 = shalt.err (!%p632_p1)
}
  0x25   : > { %s636_s20 = scalar_lea.vmem %s865_s4, 1024  ;;  %s769_s26 = smov [#allocation2]  }
  0x26   : > { %p637_p2 = scmp.ne.s32.totalorder %s865_s4, %s636_s20  ;;  %s641_s27 = sshll.u32 %s769_s26, 4  ;;  %s642_s27 = int_to_ptr.vmem [resolvable:$false] %s641_s27 }
  0x27   : > { %s643_s28 = scalar_lea.vmem %s642_s27, 2048  ;;  %p644_p9 = scmp.lt.s32.totalorder %s865_s4, %s642_s27 }
  0x28   : > { %p639_p5 = pnand %p637_p2, %p623_p3  ;;  %p645_p4 = scmp.lt.s32.totalorder %s643_s28, %s636_s20 }
  0x2a   : > { %p640_p11 = pneg %p639_p5  ;;  %p646_p7 = por %p645_p4, %p644_p9 }
  0x2c   : > { %p647_p10 = pnand %p646_p7, %p640_p11 }
  0x2e   : > { %650 = shalt.err (!%p647_p10)
}
  0x2f   : > { %s770_s29 = smov 128   ;;  %s771_s3 = smov 8  }
  0x30   : > { %527 = dma.hbm_to_vmem [thread:$0]  (!%p869_p0), %s863_s30, 1024, %s865_s4, %s134_s6, %s770_s29, %s770_s29, %s771_s3  }
  0x31   : > { %p172_p12 = scmp.lt.s32.totalorder %s767_s14, 3  ;;  %s505_s7 = sshll.u32 %s856_s25, 1 }
  0x32   : > { %s506_s8 = sshll.u32 %s763_s13, 5  ;;  %p1120_p9 = scmp.ge.s32.totalorder %s767_s14, 1 }
  0x33   : > { %s914_s19 = scalar_lea.hbm %s1111_s1, %s506_s8  ;;  %s160_s20 = scalar_lea.vmem [#allocation5], %s505_s7 }
  0x34   : > { %p907_p11 = pnand %p1120_p9, %p172_p12  ;;  %s167_s26 = sshll.u32 %s160_s20, 4  ;;  %s168_s26 = int_to_ptr.vmem [resolvable:$true] %s167_s26 }
  0x35   : > { %s157_s30 = scalar_lea.sflag [#allocation6], %s856_s25  ;;  %s651_s4 = scalar_lea.hbm %s914_s19, 32 }
  0x36   : > { %s1121_s15 = scalar_select %p907_p11, 1, 0 }
  0x37   : > { %p652_p1 = scmp.ne.s32.totalorder %s914_s19, %s651_s4  ;;  %s656_s28 = scalar_lea.hbm %s1111_s1, 64 }
  0x38   : > { %p657_p2 = scmp.lt.u32.totalorder %s914_s19, %s1111_s1  ;;  %p658_p5 = scmp.lt.u32.totalorder %s656_s28, %s651_s4 }
  0x39   : > { %p654_p6 = pnand %p652_p1, %p623_p3  ;;  %p660_p7 = scmp.lt.u32.totalorder %s651_s4, %s914_s19 }
  0x3a   : > { %p659_p4 = por %p658_p5, %p657_p2 }
  0x3b   : > { %p655_p13 = pneg %p654_p6 }
  0x3c   : > { %p661_p10 = por %p660_p7, %p659_p4 }
  0x3e   : > { %p662_p12 = pnand %p661_p10, %p655_p13 }
  0x40   : > { %665 = shalt.err (!%p662_p12)
}
  0x41   : > { %s666_s25 = scalar_lea.vmem %s168_s26, 32  ;;  %s772_s7 = smov [#allocation5]  }
  0x42   : > { %p667_p9 = scmp.ne.s32.totalorder %s168_s26, %s666_s25  ;;  %s671_s8 = sshll.u32 %s772_s7, 4  ;;  %s672_s8 = int_to_ptr.vmem [resolvable:$false] %s671_s8 }
  0x43   : > { %s673_s16 = scalar_lea.vmem %s672_s8, 64  ;;  %p674_p8 = scmp.lt.s32.totalorder %s168_s26, %s672_s8 }
  0x44   : > { %p669_p1 = pnand %p667_p9, %p623_p3  ;;  %p675_p11 = scmp.lt.s32.totalorder %s673_s16, %s666_s25 }
  0x46   : > { %p670_p6 = pneg %p669_p1  ;;  %p676_p2 = por %p675_p11, %p674_p8 }
  0x48   : > { %p677_p5 = pnand %p676_p2, %p670_p6 }
  0x4a   : > { %680 = shalt.err (!%p677_p5)
}
  0x4b   : > { %530 = dma.hbm_to_vmem [thread:$0]  (!%p869_p0), %s914_s19, 32, %s168_s26, %s157_s30  }
  0x4c   : > { %p1122_p13 = scmp.ne.s32.totalorder %s1121_s15, 0 }
  0x4d   : > { %s939_s18 = sand.u32 (!%p1122_p13), 1, %s751_s10   ;;  %p1123_p8 = scmp.ne.s32.totalorder (!%p1122_p13), %s1116_s21, 0 }
  0x4e   : > { %176 = sbr.rel (%p1122_p13) target bundleno = 296 (0x128), region = 28  ;;  %s508_s20 = sshll.u32 (!%p1122_p13), %s939_s18, 6 }
  0x4f   : > { %s179_s4 = scalar_lea.sflag (!%p1122_p13), [#allocation3], %s939_s18  ;;  %s182_s6 = scalar_lea.vmem (!%p1122_p13), [#allocation2], %s508_s20 }
  0x55   : > { %734 = dma.done.wait (%p1123_p8), %s179_s4, 1024  }
  0x56   : > { %736 = vsyncadd (%p1123_p8), %s179_s4, 4294966272  ;;  %s509_s5 = sshll.u32 %s939_s18, 1  ;;  %s188_s15 = scalar_lea.sflag [#allocation6], %s939_s18 }
  0x57   : > { %s951_s19 = scalar_lea.vmem [#allocation5], %s509_s5 }
  0x58   : > { %738 = dma.done.wait (%p1123_p8), %s188_s15, 32  }
  0x59   : > { %740 = vsyncadd (%p1123_p8), %s188_s15, 4294967264  ;;  %v957_v0 = vld [vmem:[%s182_s6 + $0x10] sm:$0xff]  ;;  %v959_v1 = vld [vmem:[%s182_s6] sm:$0xff]  ;;  %v340_v18 = vlaneseq  ;;  %s1034_s21 = scalar_lea.vmem [#allocation7], %s508_s20  ;;  %s517_s26 = sshll.u32 %s759_s12, 10 }
  0x5a   : > { %v961_v2 = vld [vmem:[%s182_s6 + $0x18] sm:$0xff]  ;;  %v230_v3 = vmul.f32 %v957_v0, %v957_v0  ;;  %v228_v4 = vmul.f32 %v959_v1, %v959_v1  ;;  %v967_v5 = vld [vmem:[%s182_s6 + $0x8] sm:$0xff]  ;;  %v975_v9 = vld [vmem:[%s182_s6 + $0x20] sm:$0xff]  ;;  %s388_s30 = sshll.u32 %s1034_s21, 4  ;;  %s1057_s29 = scalar_lea.hbm %s1112_s2, %s517_s26  ;;  %s1059_s30 = int_to_ptr.vmem [resolvable:$true] %s388_s30 }
  0x5b   : > { %v231_v6 = vmul.f32 %v961_v2, %v961_v2  ;;  %v229_v7 = vmul.f32 %v967_v5, %v967_v5  ;;  %v973_v8 = vld [vmem:[%s182_s6 + $0x28] sm:$0xff]  ;;  %v232_v11 = vmul.f32 %v975_v9, %v975_v9  ;;  %v981_v12 = vld [vmem:[%s182_s6 + $0x38] sm:$0xff]  ;;  %v983_v13 = vld [vmem:[%s182_s6 + $0x30] sm:$0xff]  ;;  %v989_v21 = vshrl.u32 %v340_v18, 7  ;;  %s373_s12 = scalar_lea.sflag [#allocation4], %s939_s18  ;;  %s681_s3 = scalar_lea.vmem %s1059_s30, 1024 }
  0x5c   : > { %240 = vadd.xlane.f32.xlu1 %v230_v3  ;;  %236 = vadd.xlane.f32.xlu0 %v228_v4  ;;  %v233_v10 = vmul.f32 %v973_v8, %v973_v8  ;;  %v235_v14 = vmul.f32 %v981_v12, %v981_v12  ;;  %v234_v15 = vmul.f32 %v983_v13, %v983_v13  ;;  %v996_v27 = vld [vmem:[%s951_s19] sm:$0x3]  ;;  %p682_p0 = scmp.ne.s32.totalorder %s1059_s30, %s681_s3  ;;  %p1124_p3 = scmp.ne.s32.totalorder %s1117_s22, 0 }
  0x5d   : > { %v342_v25 = vsub.s32 0, %v989_v21  ;;  %v354_v28 = vsub.s32 1, %v989_v21  ;;  %s773_s25 = smov [#allocation7]  }
  0x5e   : > { %p683_p11 = pnand %p682_p0, %p1124_p3  ;;  %s685_s7 = sshll.u32 %s773_s25, 4  ;;  %s686_s7 = int_to_ptr.vmem [resolvable:$false] %s685_s7 }
  0x5f   : > { %v1006_v37 = vrot.slane %v996_v27, %v342_v25  ;;  %s687_s8 = scalar_lea.vmem %s686_s7, 2048  ;;  %p688_p7 = scmp.lt.s32.totalorder %s1059_s30, %s686_s7 }
  0x60   : > { %242 = vadd.xlane.f32.xlu1 %v231_v6  ;;  %238 = vadd.xlane.f32.xlu0 %v229_v7  ;;  %p684_p4 = pneg %p683_p11  ;;  %p689_p10 = scmp.lt.s32.totalorder %s687_s8, %s681_s3 }
  0x62   : > { %p690_p12 = por %p689_p10, %p688_p7 }
  0x64   : > { %246 = vadd.xlane.f32.xlu1 %v233_v10  ;;  %244 = vadd.xlane.f32.xlu0 %v232_v11  ;;  %p691_p9 = pnand %p690_p12, %p684_p4 }
  0x68   : > { %250 = vadd.xlane.f32.xlu1 %v235_v14  ;;  %248 = vadd.xlane.f32.xlu0 %v234_v15 }
  0xe9   : > { %v241_v16 = vpop.xlane.xlu1 %240  ;;  %v237_v17 = vpop.xlane.xlu0 %236 }
  0xea   : > { %589 = vrsqrt.f32 %v241_v16  ;;  %vm268_vm0 = vcmp.eq.f32.partialorder %v241_v16, inf  ;;  %vm270_vm1 = vcmp.eq.f32.partialorder %v241_v16, 0.0  ;;  %v271_v32 = vand.u32 2147483648, %v241_v16 }
  0xeb   : > { %591 = vrsqrt.f32 %v237_v17  ;;  %vm254_vm2 = vcmp.eq.f32.partialorder %v237_v17, inf  ;;  %v257_v35 = vand.u32 2147483648, %v237_v17  ;;  %vm256_vm3 = vcmp.eq.f32.partialorder %v237_v17, 0.0 }
  0xed   : > { %v243_v19 = vpop.xlane.xlu1 %242  ;;  %v239_v20 = vpop.xlane.xlu0 %238 }
  0xee   : > { %593 = vrsqrt.f32 %v243_v19  ;;  %vm275_vm4 = vcmp.eq.f32.partialorder %v243_v19, inf  ;;  %vm277_vm5 = vcmp.eq.f32.partialorder %v243_v19, 0.0  ;;  %v278_v45 = vand.u32 2147483648, %v243_v19 }
  0xef   : > { %595 = vrsqrt.f32 %v239_v20  ;;  %vm261_vm6 = vcmp.eq.f32.partialorder %v239_v20, inf  ;;  %v264_v48 = vand.u32 2147483648, %v239_v20  ;;  %vm263_vm7 = vcmp.eq.f32.partialorder %v239_v20, 0.0 }
  0xf1   : > { %v247_v22 = vpop.xlane.xlu1 %246  ;;  %v991_v23 = vpop.xlane.xlu0 %244 }
  0xf2   : > { %597 = vrsqrt.f32 %v247_v22  ;;  %vm289_vm8 = vcmp.eq.f32.partialorder %v247_v22, inf  ;;  %vm291_vm9 = vcmp.eq.f32.partialorder %v247_v22, 0.0  ;;  %v292_v57 = vand.u32 2147483648, %v247_v22 }
  0xf3   : > { %599 = vrsqrt.f32 %v991_v23  ;;  %vm282_vm10 = vcmp.eq.f32.partialorder %v991_v23, inf  ;;  %v285_v60 = vand.u32 2147483648, %v991_v23  ;;  %vm284_vm11 = vcmp.eq.f32.partialorder %v991_v23, 0.0 }
  0xf4   : > { %v590_v24 = vpop.eup %589 }
  0xf5   : > { %v592_v26 = vpop.eup %591  ;;  %v267_v29 = vmul.f32 %v590_v24, %v241_v16  ;;  %v999_v30 = vpop.xlane.xlu1 %250  ;;  %v355_v24 = vrot.slane %v996_v27, %v354_v28 }
  0xf6   : > { %v1001_v31 = vpop.xlane.xlu0 %248  ;;  %v253_v33 = vmul.f32 %v592_v26, %v237_v17  ;;  %601 = vrsqrt.f32 %v999_v30  ;;  %vm303_vm12 = vcmp.eq.f32.partialorder %v999_v30, inf  ;;  %vm305_vm13 = vcmp.eq.f32.partialorder %v999_v30, 0.0 }
  0xf7   : > { %v269_v34 = vsel %vm268_vm0, %v241_v16, %v267_v29  ;;  %603 = vrsqrt.f32 %v1001_v31  ;;  %v306_v11 = vand.u32 2147483648, %v999_v30  ;;  %vm296_vm14 = vcmp.eq.f32.partialorder %v1001_v31, inf }
  0xf8   : > { %v594_v36 = vpop.eup %593  ;;  %v272_v38 = vsel %vm270_vm1, %v271_v32, %v269_v34  ;;  %v255_v39 = vsel %vm254_vm2, %v237_v17, %v253_v33  ;;  %v299_v16 = vand.u32 2147483648, %v1001_v31  ;;  %vm298_vm15 = vcmp.eq.f32.partialorder %v1001_v31, 0.0 }
  0xf9   : > { %v596_v40 = vpop.eup %595  ;;  %v310_v41 = vmax.f32 %v272_v38, 1e-12  ;;  %v258_v42 = vsel %vm256_vm3, %v257_v35, %v255_v39  ;;  %v274_v43 = vmul.f32 %v594_v36, %v243_v19 }
  0xfa   : > { %v308_v44 = vmax.f32 %v258_v42, 1e-12  ;;  %v260_v46 = vmul.f32 %v596_v40, %v239_v20 }
  0xfb   : > { %605 = vrcp.f32 %v310_v41  ;;  %v276_v47 = vsel %vm275_vm4, %v243_v19, %v274_v43 }
  0xfc   : > { %v598_v49 = vpop.eup %597  ;;  %607 = vrcp.f32 %v308_v44  ;;  %v279_v50 = vsel %vm277_vm5, %v278_v45, %v276_v47  ;;  %v262_v51 = vsel %vm261_vm6, %v239_v20, %v260_v46 }
  0xfd   : > { %v600_v52 = vpop.eup %599  ;;  %v311_v53 = vmax.f32 %v279_v50, 1e-12  ;;  %v265_v54 = vsel %vm263_vm7, %v264_v48, %v262_v51  ;;  %v288_v55 = vmul.f32 %v598_v49, %v247_v22 }
  0xfe   : > { %v309_v56 = vmax.f32 %v265_v54, 1e-12  ;;  %v281_v58 = vmul.f32 %v600_v52, %v991_v23 }
  0xff   : > { %609 = vrcp.f32 %v311_v53  ;;  %v290_v59 = vsel %vm289_vm8, %v247_v22, %v288_v55 }
 0x100   : > { %v602_v61 = vpop.eup %601  ;;  %611 = vrcp.f32 %v309_v56  ;;  %v293_v62 = vsel %vm291_vm9, %v292_v57, %v290_v59  ;;  %v283_v63 = vsel %vm282_vm10, %v991_v23, %v281_v58 }
 0x101   : > { %v604_v3 = vpop.eup %603  ;;  %v313_v4 = vmax.f32 %v293_v62, 1e-12  ;;  %v286_v6 = vsel %vm284_vm11, %v285_v60, %v283_v63  ;;  %v302_v7 = vmul.f32 %v602_v61, %v999_v30 }
 0x102   : > { %v312_v10 = vmax.f32 %v286_v6, 1e-12  ;;  %v295_v14 = vmul.f32 %v604_v3, %v1001_v31 }
 0x103   : > { %613 = vrcp.f32 %v313_v4  ;;  %v304_v15 = vsel %vm303_vm12, %v999_v30, %v302_v7 }
 0x104   : > { %615 = vrcp.f32 %v312_v10  ;;  %v307_v17 = vsel %vm305_vm13, %v306_v11, %v304_v15  ;;  %v297_v18 = vsel %vm296_vm14, %v1001_v31, %v295_v14 }
 0x105   : > { %v606_v19 = vpop.eup %605  ;;  %v315_v20 = vmax.f32 %v307_v17, 1e-12  ;;  %v300_v22 = vsel %vm298_vm15, %v299_v16, %v297_v18 }
 0x106   : > { %v608_v23 = vpop.eup %607  ;;  %v334_v25 = vmul.f32 %v606_v19, %v957_v0  ;;  %v314_v26 = vmax.f32 %v300_v22, 1e-12 }
 0x107   : > { %v332_v29 = vmul.f32 %v608_v23, %v959_v1  ;;  %617 = vrcp.f32 %v315_v20 }
 0x108   : > { %v346_v30 = vmul.f32 %v1006_v37, %v334_v25  ;;  %619 = vrcp.f32 %v314_v26 }
 0x109   : > { %v610_v32 = vpop.eup %609  ;;  %v344_v31 = vmul.f32 %v1006_v37, %v332_v29 }
 0x10a   : > { %v612_v33 = vpop.eup %611  ;;  %v358_v34 = vadd.f32 %v355_v24, %v346_v30  ;;  %v335_v35 = vmul.f32 %v610_v32, %v961_v2 }
 0x10b   : > { %v356_v36 = vadd.f32 %v355_v24, %v344_v31  ;;  %v333_v21 = vmul.f32 %v612_v33, %v967_v5 }
 0x10c   : > { %366 = vst [vmem:[%s1034_s21 + $0x10] sm:$0xff] %v358_v34  ;;  %v347_v0 = vmul.f32 %v1006_v37, %v335_v35 }
 0x10d   : > { %v614_v1 = vpop.eup %613  ;;  %364 = vst [vmem:[%s1034_s21] sm:$0xff] %v356_v36  ;;  %v345_v27 = vmul.f32 %v1006_v37, %v333_v21 }
 0x10e   : > { %v616_v28 = vpop.eup %615  ;;  %v359_v2 = vadd.f32 %v355_v24, %v347_v0  ;;  %v337_v5 = vmul.f32 %v614_v1, %v973_v8 }
 0x10f   : > { %v357_v38 = vadd.f32 %v355_v24, %v345_v27  ;;  %v336_v39 = vmul.f32 %v616_v28, %v975_v9 }
 0x110   : > { %367 = vst [vmem:[%s1034_s21 + $0x18] sm:$0xff] %v359_v2  ;;  %v349_v40 = vmul.f32 %v1006_v37, %v337_v5 }
 0x111   : > { %v618_v41 = vpop.eup %617  ;;  %365 = vst [vmem:[%s1034_s21 + $0x8] sm:$0xff] %v357_v38  ;;  %v348_v42 = vmul.f32 %v1006_v37, %v336_v39 }
 0x112   : > { %v620_v43 = vpop.eup %619  ;;  %v361_v44 = vadd.f32 %v355_v24, %v349_v40  ;;  %v339_v45 = vmul.f32 %v618_v41, %v981_v12 }
 0x113   : > { %v360_v46 = vadd.f32 %v355_v24, %v348_v42  ;;  %v338_v8 = vmul.f32 %v620_v43, %v983_v13 }
 0x114   : > { %369 = vst [vmem:[%s1034_s21 + $0x28] sm:$0xff] %v361_v44  ;;  %v351_v9 = vmul.f32 %v1006_v37, %v339_v45 }
 0x115   : > { %368 = vst [vmem:[%s1034_s21 + $0x20] sm:$0xff] %v360_v46  ;;  %v350_v47 = vmul.f32 %v1006_v37, %v338_v8 }
 0x116   : > { %v363_v48 = vadd.f32 %v355_v24, %v351_v9 }
 0x117   : > { %v362_v12 = vadd.f32 %v355_v24, %v350_v47 }
 0x118   : > { %371 = vst [vmem:[%s1034_s21 + $0x38] sm:$0xff] %v363_v48 }
 0x119   : > { %370 = vst [vmem:[%s1034_s21 + $0x30] sm:$0xff] %v362_v12 }
 0x11a   : > { %694 = shalt.err (!%p691_p9)
}
 0x11b   : > { %s695_s16 = scalar_lea.hbm %s1057_s29, 1024  ;;  %s699_s6 = scalar_lea.hbm %s1112_s2, 2048 }
 0x11c   : > { %p696_p1 = scmp.ne.s32.totalorder %s1057_s29, %s695_s16  ;;  %p700_p5 = scmp.lt.u32.totalorder %s1057_s29, %s1112_s2 }
 0x11d   : > { %p701_p13 = scmp.lt.u32.totalorder %s699_s6, %s695_s16  ;;  %p703_p0 = scmp.lt.u32.totalorder %s695_s16, %s1057_s29 }
 0x11e   : > { %p697_p6 = pnand %p696_p1, %p1124_p3 }
 0x11f   : > { %p702_p8 = por %p701_p13, %p700_p5 }
 0x120   : > { %p698_p2 = pneg %p697_p6 }
 0x121   : > { %p704_p11 = por %p703_p0, %p702_p8 }
 0x123   : > { %p705_p4 = pnand %p704_p11, %p698_p2 }
 0x125   : > { %708 = shalt.err (!%p705_p4)
}
 0x126   : > { %s774_s19 = smov 128   ;;  %s775_s21 = smov 8  }
 0x127   : > { %522 = dma.vmem_to_hbm [thread:$0]  (%p1124_p3), %s1059_s30, 1024, %s1057_s29, %s373_s12, %s774_s19, %s774_s19, %s775_s21  }
 0x128 PF: > { %s403_s26 = sand.u32 1, %s747_s9   ;;  %p1125_p7 = scmp.ne.s32.totalorder %s1118_s24, 0 }
 0x129   : > { %p1126_p10 = scmp.ge.s32.totalorder %s767_s14, 2  ;;  %s404_s27 = scalar_lea.sflag [#allocation4], %s403_s26 }
 0x12b   : > { %p532_p12 = pnand %p1126_p10, %p1125_p7 }
 0x12d   : > { %742 = dma.done.wait (!%p532_p12), %s404_s27, 1024  }
 0x12e   : > { %744 = vsyncadd (!%p532_p12), %s404_s27, 4294966272  ;;  %s21_s14 = sadd.s32 1, %s767_s14   ;;  %s1127_s9 = smov %s751_s10 }
 0x12f   : > { %p18_p9 = scmp.ge.s32.totalorder %s21_s14, 4   ;;  %s1128_s10 = smov %s755_s11 }
 0x130   : > { %s1129_s11 = smov %s847_s23  ;;  %s1130_s12 = smov %s763_s13 }
 0x131   : > { %s1131_s13 = smov %s1133_s17  ;;  %20 = sbr.rel (!%p18_p9) target bundleno = 8 (0x8), region = 86 }
 0x138   :  { %409 = vsyncpa [#allocation3], 1 }
 0x139   :  { %411 = vsyncpa [#allocation3 + $0x1], 1 }
 0x13a   :  { %412 = vsyncpa [#allocation6], 1 }
 0x13b   :  { %414 = vsyncpa [#allocation6 + $0x1], 1 }
 0x13c   :  { %415 = vsyncpa [#allocation4], 1 }
 0x13d   :  { %417 = vsyncpa [#allocation4 + $0x1], 1 }

</bundles_post_ra>
